<compile_context>
chip_gen: v7x
topology: tpu7x:2x2x1
jax: 0.10.0
libtpu: 0.0.40
codegen_flags: <defaults>
</compile_context>

<pallas_src>
import functools
import numpy as np
import jax
import jax.numpy as jnp
from jax.experimental import pallas as pl
from jax.experimental.pallas import tpu as pltpu

INPUT_DIM = 10
FEATURE_DIM = 64
DENSE_DIM = 32
CONV_OUT_C = 4
CONV_K = 3
CONV_OUT_L = INPUT_DIM - CONV_K + 1  # 8
OUT_PAD = 128                        # lane-dense padded output width
MAX_TB = 1024                        # batch tile (rows); safe for v5e/v6e/v7x VMEM


def _round_up(n, m):
    return ((n + m - 1) // m) * m


def mlp_kernel(x_ref, wc_ref, bc_ref, a_ref,
               w1_ref, b1_ref, w2_ref, b2_ref, w3_ref, b3_ref,
               wip_ref, bip_ref, o_ref):
    # Read each PReLU scalar exactly once (SMEM -> sreg).
    a0 = a_ref[0]
    a1 = a_ref[1]
    a2 = a_ref[2]
    a3 = a_ref[3]

    def prelu(v, a):
        # PyTorch PReLU with a single shared parameter (f32 elementwise).
        return jnp.maximum(v, 0.0) + a * jnp.minimum(v, 0.0)

    # conv1 lowered to matmul (channel-major flatten == view(-1, 32))
    x = x_ref[...].astype(jnp.bfloat16)                                 # (TB, 10)
    h = jnp.dot(x, wc_ref[...], preferred_element_type=jnp.float32) + bc_ref[...]
    h = prelu(h, a0)                                                    # prelu0

    x1 = prelu(jnp.dot(h.astype(jnp.bfloat16), w1_ref[...],
                       preferred_element_type=jnp.float32) + b1_ref[...], a1)
    x2 = prelu(jnp.dot(x1.astype(jnp.bfloat16), w2_ref[...],
                       preferred_element_type=jnp.float32) + b2_ref[...], a2)
    s12 = x1 + x2                                                       # reused residual sum
    x3 = prelu(jnp.dot(s12.astype(jnp.bfloat16), w3_ref[...],
                       preferred_element_type=jnp.float32) + b3_ref[...], a3)

    # ip1 (padded to 128 output lanes -> unmasked full-lane stores)
    o_ref[...] = (jnp.dot((x3 + s12).astype(jnp.bfloat16), wip_ref[...],
                          preferred_element_type=jnp.float32) + bip_ref[...])


def conv1d_to_matrix(w_conv, b_conv):
    """Lower Conv1d(1, 4, k=3) on length-10 input to a (10, 32) matrix + (32,) bias
    whose output column order matches PyTorch's (B,4,8).view(-1, 32)."""
    wm = np.zeros((INPUT_DIM, CONV_OUT_C * CONV_OUT_L), dtype=np.float32)
    bm = np.zeros((CONV_OUT_C * CONV_OUT_L,), dtype=np.float32)
    w = np.asarray(w_conv)
    b = np.asarray(b_conv)
    for c in range(CONV_OUT_C):
        for l in range(CONV_OUT_L):
            j = c * CONV_OUT_L + l
            bm[j] = b[c]
            for k in range(CONV_K):
                wm[l + k, j] = w[c, 0, k]
    return wm, bm


def prepare_params(params):
    """One-time host-side weight prep: conv lowering, (out,in)->(in,out) transposes,
    lane-dense padding of ip1, bf16 casts of matmul operands."""
    wc, bc = conv1d_to_matrix(params["w_conv"], params["b_conv"])

    wip_t = np.asarray(params["wip"]).T                   # (32, 64)
    wip_p = np.zeros((DENSE_DIM, OUT_PAD), dtype=np.float32)
    wip_p[:, :FEATURE_DIM] = wip_t
    bip_p = np.zeros((OUT_PAD,), dtype=np.float32)
    bip_p[:FEATURE_DIM] = np.asarray(params["bip"])

    return dict(
        wc=jnp.asarray(wc, jnp.bfloat16),
        bc=jnp.asarray(bc, jnp.float32)[None, :],
        a=jnp.asarray(params["a"], jnp.float32),
        w1=jnp.asarray(np.asarray(params["w1"]).T, jnp.bfloat16),
        b1=jnp.asarray(params["b1"], jnp.float32)[None, :],
        w2=jnp.asarray(np.asarray(params["w2"]).T, jnp.bfloat16),
        b2=jnp.asarray(params["b2"], jnp.float32)[None, :],
        w3=jnp.asarray(np.asarray(params["w3"]).T, jnp.bfloat16),
        b3=jnp.asarray(params["b3"], jnp.float32)[None, :],
        wip=jnp.asarray(wip_p, jnp.bfloat16),
        bip=jnp.asarray(bip_p, jnp.float32)[None, :],
    )


def init_params(key):
    ks = jax.random.split(key, 10)
    scale = 0.1
    w_conv = scale * jax.random.normal(ks[0], (CONV_OUT_C, 1, CONV_K), jnp.float32)
    b_conv = scale * jax.random.normal(ks[1], (CONV_OUT_C,), jnp.float32)
    w1 = scale * jax.random.normal(ks[2], (DENSE_DIM, CONV_OUT_C * CONV_OUT_L), jnp.float32)
    b1 = scale * jax.random.normal(ks[3], (DENSE_DIM,), jnp.float32)
    w2 = scale * jax.random.normal(ks[4], (DENSE_DIM, DENSE_DIM), jnp.float32)
    b2 = scale * jax.random.normal(ks[5], (DENSE_DIM,), jnp.float32)
    w3 = scale * jax.random.normal(ks[6], (DENSE_DIM, DENSE_DIM), jnp.float32)
    b3 = scale * jax.random.normal(ks[7], (DENSE_DIM,), jnp.float32)
    wip = scale * jax.random.normal(ks[8], (FEATURE_DIM, DENSE_DIM), jnp.float32)
    bip = scale * jax.random.normal(ks[9], (FEATURE_DIM,), jnp.float32)
    a = jnp.full((4,), 0.25, jnp.float32)                 # PyTorch PReLU default
    return dict(w_conv=w_conv, b_conv=b_conv, a=a,
                w1=w1, b1=b1, w2=w2, b2=b2, w3=w3, b3=b3, wip=wip, bip=bip)


@functools.partial(jax.jit, static_argnames=())
def mlp_forward(x_ncl, prep):
    """x_ncl: (B, 1, 10) float32, as in PyTorch. prep: prepare_params(...) output.
    Returns (B, 64) float32."""
    B = x_ncl.shape[0]
    x = x_ncl.reshape(B, INPUT_DIM)

    # Batch tiling (pipelined, 'parallel' grid axis -> sharded across TCs on v7x).
    TB = min(MAX_TB, _round_up(B, 8))
    B_pad = _round_up(B, TB)
    if B_pad != B:
        x = jnp.pad(x, ((0, B_pad - B), (0, 0)))
    grid = (pl.cdiv(B_pad, TB),)

    def resident(shape):
        # Full-array VMEM block, same block for every grid step (stays resident).
        return pl.BlockSpec(shape, lambda i: tuple(0 for _ in shape))

    in_specs = [
        pl.BlockSpec((TB, INPUT_DIM), lambda i: (i, 0)),                # x
        resident((INPUT_DIM, CONV_OUT_C * CONV_OUT_L)),                 # wc
        resident((1, CONV_OUT_C * CONV_OUT_L)),                         # bc
        pl.BlockSpec(memory_space=pltpu.MemorySpace.SMEM),              # PReLU alphas (4,)
        resident((CONV_OUT_C * CONV_OUT_L, DENSE_DIM)),                 # w1
        resident((1, DENSE_DIM)),                                       # b1
        resident((DENSE_DIM, DENSE_DIM)),                               # w2
        resident((1, DENSE_DIM)),                                       # b2
        resident((DENSE_DIM, DENSE_DIM)),                               # w3
        resident((1, DENSE_DIM)),                                       # b3
        resident((DENSE_DIM, OUT_PAD)),                                 # wip (padded)
        resident((1, OUT_PAD)),                                         # bip (padded)
    ]
    out_specs = pl.BlockSpec((TB, OUT_PAD), lambda i: (i, 0))

    out_padded = pl.pallas_call(
        mlp_kernel,
        out_shape=jax.ShapeDtypeStruct((B_pad, OUT_PAD), jnp.float32),
        grid=grid,
        in_specs=in_specs,
        out_specs=out_specs,
        compiler_params=pltpu.CompilerParams(
            dimension_semantics=("parallel",)),
    )(x, prep["wc"], prep["bc"], prep["a"],
      prep["w1"], prep["b1"], prep["w2"], prep["b2"],
      prep["w3"], prep["b3"], prep["wip"], prep["bip"])

    return out_padded[:B, :FEATURE_DIM]


def mlp_reference(x_ncl, params):
    """Pure-JAX f32 reference matching the PyTorch forward exactly."""
    B = x_ncl.shape[0]
    x = x_ncl.reshape(B, INPUT_DIM)
    w_conv, b_conv = params["w_conv"], params["b_conv"]
    a = params["a"]

    def prelu(v, aa):
        return jnp.maximum(v, 0.0) + aa * jnp.minimum(v, 0.0)

    cols = []
    for c in range(CONV_OUT_C):
        for l in range(CONV_OUT_L):
            cols.append((x[:, l:l + CONV_K] * w_conv[c, 0]).sum(-1) + b_conv[c])
    h = jnp.stack(cols, axis=-1)                          # (B, 32) channel-major
    h = prelu(h, a[0])
    x1 = prelu(h @ params["w1"].T + params["b1"], a[1])
    x2 = prelu(x1 @ params["w2"].T + params["b2"], a[2])
    x3 = prelu((x2 + x1) @ params["w3"].T + params["b3"], a[3])
    return (x3 + x2 + x1) @ params["wip"].T + params["bip"]


if __name__ == "__main__":
    key = jax.random.PRNGKey(0)
    k_x, k_p = jax.random.split(key)

    B = 8
    x = jax.random.normal(k_x, (B, 1, INPUT_DIM), jnp.float32)   # (B, 1, 10) NCL
    params = init_params(k_p)
    prep = prepare_params(params)                                # hoisted, one-time

    out = mlp_forward(x, prep)
    out = jax.block_until_ready(out)

    ref = mlp_reference(x, params)
    assert out.shape == (B, FEATURE_DIM)
    # bf16 matmul operands (f32 accumulation) -> relaxed tolerance vs f32 reference.
    np.testing.assert_allclose(np.asarray(out), np.asarray(ref), rtol=1e-2, atol=1e-2)

    print("KERNEL_OK")
</pallas_src>

<mosaic_0001>
module attributes {stable_mosaic.version = 11 : i64} {
  func.func @mlp_kernel(%arg0: i32, %arg1: memref<8x10xf32, #tpu.memory_space<vmem>>, %arg2: memref<10x32xbf16, #tpu.memory_space<vmem>>, %arg3: memref<1x32xf32, #tpu.memory_space<vmem>>, %arg4: memref<4xf32, #tpu.memory_space<smem>>, %arg5: memref<32x32xbf16, #tpu.memory_space<vmem>>, %arg6: memref<1x32xf32, #tpu.memory_space<vmem>>, %arg7: memref<32x32xbf16, #tpu.memory_space<vmem>>, %arg8: memref<1x32xf32, #tpu.memory_space<vmem>>, %arg9: memref<32x32xbf16, #tpu.memory_space<vmem>>, %arg10: memref<1x32xf32, #tpu.memory_space<vmem>>, %arg11: memref<32x128xbf16, #tpu.memory_space<vmem>>, %arg12: memref<1x128xf32, #tpu.memory_space<vmem>>, %arg13: memref<8x128xf32, #tpu.memory_space<vmem>>) attributes {dimension_semantics = [#tpu.dimension_semantics<parallel>], iteration_bounds = array<i64: 1>, scalar_prefetch = 0 : i64, scratch_operands = 0 : i64, tpu.core_type = #tpu.core_type<tc>, window_params = [{transform_indices = @transform_0, window_bounds = array<i64: 8, 10>}, {pipeline_mode = #tpu.pipeline_mode<synchronous>, transform_indices = @transform_1, window_bounds = array<i64: 10, 32>}, {pipeline_mode = #tpu.pipeline_mode<synchronous>, transform_indices = @transform_2, window_bounds = array<i64: 1, 32>}, {transform_indices = @transform_3, window_bounds = array<i64: 4>}, {pipeline_mode = #tpu.pipeline_mode<synchronous>, transform_indices = @transform_4, window_bounds = array<i64: 32, 32>}, {pipeline_mode = #tpu.pipeline_mode<synchronous>, transform_indices = @transform_5, window_bounds = array<i64: 1, 32>}, {pipeline_mode = #tpu.pipeline_mode<synchronous>, transform_indices = @transform_6, window_bounds = array<i64: 32, 32>}, {pipeline_mode = #tpu.pipeline_mode<synchronous>, transform_indices = @transform_7, window_bounds = array<i64: 1, 32>}, {pipeline_mode = #tpu.pipeline_mode<synchronous>, transform_indices = @transform_8, window_bounds = array<i64: 32, 32>}, {pipeline_mode = #tpu.pipeline_mode<synchronous>, transform_indices = @transform_9, window_bounds = array<i64: 1, 32>}, {pipeline_mode = #tpu.pipeline_mode<synchronous>, transform_indices = @transform_10, window_bounds = array<i64: 32, 128>}, {pipeline_mode = #tpu.pipeline_mode<synchronous>, transform_indices = @transform_11, window_bounds = array<i64: 1, 128>}, {transform_indices = @transform_12, window_bounds = array<i64: 8, 128>}]} {
    %c0 = arith.constant 0 : index
    %0 = memref.load %arg4[%c0] : memref<4xf32, #tpu.memory_space<smem>>
    %c1 = arith.constant 1 : index
    %1 = memref.load %arg4[%c1] : memref<4xf32, #tpu.memory_space<smem>>
    %c2 = arith.constant 2 : index
    %2 = memref.load %arg4[%c2] : memref<4xf32, #tpu.memory_space<smem>>
    %c3 = arith.constant 3 : index
    %3 = memref.load %arg4[%c3] : memref<4xf32, #tpu.memory_space<smem>>
    %c0_0 = arith.constant 0 : index
    %c0_1 = arith.constant 0 : index
    %4 = vector.load %arg1[%c0_0, %c0_1] : memref<8x10xf32, #tpu.memory_space<vmem>>, vector<8x10xf32>
    %5 = arith.truncf %4 : vector<8x10xf32> to vector<8x10xbf16>
    %c0_2 = arith.constant 0 : index
    %c0_3 = arith.constant 0 : index
    %6 = vector.load %arg2[%c0_2, %c0_3] : memref<10x32xbf16, #tpu.memory_space<vmem>>, vector<10x32xbf16>
    %cst = arith.constant dense<0.000000e+00> : vector<8x32xf32>
    %7 = tpu.matmul %5, %6, %cst {dimension_numbers = #tpu.dot_dimension_numbers<[1], [0], [0], [1], [0, 0, 1, 1], [], []>} : vector<8x10xbf16>, vector<10x32xbf16>, vector<8x32xf32> -> vector<8x32xf32>
    %c0_4 = arith.constant 0 : index
    %c0_5 = arith.constant 0 : index
    %8 = vector.load %arg3[%c0_4, %c0_5] : memref<1x32xf32, #tpu.memory_space<vmem>>, vector<1x32xf32>
    %9 = vector.broadcast %8 : vector<1x32xf32> to vector<8x32xf32>
    %10 = arith.addf %7, %9 : vector<8x32xf32>
    %cst_6 = arith.constant 0.000000e+00 : f32
    %11 = vector.broadcast %cst_6 : f32 to vector<8x32xf32>
    %12 = arith.maximumf %10, %11 : vector<8x32xf32>
    %cst_7 = arith.constant 0.000000e+00 : f32
    %13 = vector.broadcast %cst_7 : f32 to vector<8x32xf32>
    %14 = arith.minimumf %10, %13 : vector<8x32xf32>
    %15 = vector.broadcast %0 : f32 to vector<8x32xf32>
    %16 = arith.mulf %15, %14 : vector<8x32xf32>
    %17 = arith.addf %12, %16 : vector<8x32xf32>
    %18 = arith.truncf %17 : vector<8x32xf32> to vector<8x32xbf16>
    %c0_8 = arith.constant 0 : index
    %c0_9 = arith.constant 0 : index
    %19 = vector.load %arg5[%c0_8, %c0_9] : memref<32x32xbf16, #tpu.memory_space<vmem>>, vector<32x32xbf16>
    %cst_10 = arith.constant dense<0.000000e+00> : vector<8x32xf32>
    %20 = tpu.matmul %18, %19, %cst_10 {dimension_numbers = #tpu.dot_dimension_numbers<[1], [0], [0], [1], [0, 0, 1, 1], [], []>} : vector<8x32xbf16>, vector<32x32xbf16>, vector<8x32xf32> -> vector<8x32xf32>
    %c0_11 = arith.constant 0 : index
    %c0_12 = arith.constant 0 : index
    %21 = vector.load %arg6[%c0_11, %c0_12] : memref<1x32xf32, #tpu.memory_space<vmem>>, vector<1x32xf32>
    %22 = vector.broadcast %21 : vector<1x32xf32> to vector<8x32xf32>
    %23 = arith.addf %20, %22 : vector<8x32xf32>
    %cst_13 = arith.constant 0.000000e+00 : f32
    %24 = vector.broadcast %cst_13 : f32 to vector<8x32xf32>
    %25 = arith.maximumf %23, %24 : vector<8x32xf32>
    %cst_14 = arith.constant 0.000000e+00 : f32
    %26 = vector.broadcast %cst_14 : f32 to vector<8x32xf32>
    %27 = arith.minimumf %23, %26 : vector<8x32xf32>
    %28 = vector.broadcast %1 : f32 to vector<8x32xf32>
    %29 = arith.mulf %28, %27 : vector<8x32xf32>
    %30 = arith.addf %25, %29 : vector<8x32xf32>
    %31 = arith.truncf %30 : vector<8x32xf32> to vector<8x32xbf16>
    %c0_15 = arith.constant 0 : index
    %c0_16 = arith.constant 0 : index
    %32 = vector.load %arg7[%c0_15, %c0_16] : memref<32x32xbf16, #tpu.memory_space<vmem>>, vector<32x32xbf16>
    %cst_17 = arith.constant dense<0.000000e+00> : vector<8x32xf32>
    %33 = tpu.matmul %31, %32, %cst_17 {dimension_numbers = #tpu.dot_dimension_numbers<[1], [0], [0], [1], [0, 0, 1, 1], [], []>} : vector<8x32xbf16>, vector<32x32xbf16>, vector<8x32xf32> -> vector<8x32xf32>
    %c0_18 = arith.constant 0 : index
    %c0_19 = arith.constant 0 : index
    %34 = vector.load %arg8[%c0_18, %c0_19] : memref<1x32xf32, #tpu.memory_space<vmem>>, vector<1x32xf32>
    %35 = vector.broadcast %34 : vector<1x32xf32> to vector<8x32xf32>
    %36 = arith.addf %33, %35 : vector<8x32xf32>
    %cst_20 = arith.constant 0.000000e+00 : f32
    %37 = vector.broadcast %cst_20 : f32 to vector<8x32xf32>
    %38 = arith.maximumf %36, %37 : vector<8x32xf32>
    %cst_21 = arith.constant 0.000000e+00 : f32
    %39 = vector.broadcast %cst_21 : f32 to vector<8x32xf32>
    %40 = arith.minimumf %36, %39 : vector<8x32xf32>
    %41 = vector.broadcast %2 : f32 to vector<8x32xf32>
    %42 = arith.mulf %41, %40 : vector<8x32xf32>
    %43 = arith.addf %38, %42 : vector<8x32xf32>
    %44 = arith.addf %30, %43 : vector<8x32xf32>
    %45 = arith.truncf %44 : vector<8x32xf32> to vector<8x32xbf16>
    %c0_22 = arith.constant 0 : index
    %c0_23 = arith.constant 0 : index
    %46 = vector.load %arg9[%c0_22, %c0_23] : memref<32x32xbf16, #tpu.memory_space<vmem>>, vector<32x32xbf16>
    %cst_24 = arith.constant dense<0.000000e+00> : vector<8x32xf32>
    %47 = tpu.matmul %45, %46, %cst_24 {dimension_numbers = #tpu.dot_dimension_numbers<[1], [0], [0], [1], [0, 0, 1, 1], [], []>} : vector<8x32xbf16>, vector<32x32xbf16>, vector<8x32xf32> -> vector<8x32xf32>
    %c0_25 = arith.constant 0 : index
    %c0_26 = arith.constant 0 : index
    %48 = vector.load %arg10[%c0_25, %c0_26] : memref<1x32xf32, #tpu.memory_space<vmem>>, vector<1x32xf32>
    %49 = vector.broadcast %48 : vector<1x32xf32> to vector<8x32xf32>
    %50 = arith.addf %47, %49 : vector<8x32xf32>
    %cst_27 = arith.constant 0.000000e+00 : f32
    %51 = vector.broadcast %cst_27 : f32 to vector<8x32xf32>
    %52 = arith.maximumf %50, %51 : vector<8x32xf32>
    %cst_28 = arith.constant 0.000000e+00 : f32
    %53 = vector.broadcast %cst_28 : f32 to vector<8x32xf32>
    %54 = arith.minimumf %50, %53 : vector<8x32xf32>
    %55 = vector.broadcast %3 : f32 to vector<8x32xf32>
    %56 = arith.mulf %55, %54 : vector<8x32xf32>
    %57 = arith.addf %52, %56 : vector<8x32xf32>
    %58 = arith.addf %57, %44 : vector<8x32xf32>
    %59 = arith.truncf %58 : vector<8x32xf32> to vector<8x32xbf16>
    %c0_29 = arith.constant 0 : index
    %c0_30 = arith.constant 0 : index
    %60 = vector.load %arg11[%c0_29, %c0_30] : memref<32x128xbf16, #tpu.memory_space<vmem>>, vector<32x128xbf16>
    %cst_31 = arith.constant dense<0.000000e+00> : vector<8x128xf32>
    %61 = tpu.matmul %59, %60, %cst_31 {dimension_numbers = #tpu.dot_dimension_numbers<[1], [0], [0], [1], [0, 0, 1, 1], [], []>} : vector<8x32xbf16>, vector<32x128xbf16>, vector<8x128xf32> -> vector<8x128xf32>
    %c0_32 = arith.constant 0 : index
    %c0_33 = arith.constant 0 : index
    %62 = vector.load %arg12[%c0_32, %c0_33] : memref<1x128xf32, #tpu.memory_space<vmem>>, vector<1x128xf32>
    %63 = vector.broadcast %62 : vector<1x128xf32> to vector<8x128xf32>
    %64 = arith.addf %61, %63 : vector<8x128xf32>
    %c0_34 = arith.constant 0 : index
    %c0_35 = arith.constant 0 : index
    %65 = vector.load %arg13[%c0_34, %c0_35] : memref<8x128xf32, #tpu.memory_space<vmem>>, vector<8x128xf32>
    tpu.vector_store %arg13[%c0_34, %c0_35], %64 {strides = array<i32>} : memref<8x128xf32, #tpu.memory_space<vmem>>, vector<8x128xf32>,
    return
  }
  func.func @transform_0(%arg0: i32) -> (i32, i32) {
    %c0_i32 = arith.constant 0 : i32
    %c0_i32_0 = arith.constant 0 : i32
    return %arg0, %c0_i32 : i32, i32
  }
  func.func @transform_1(%arg0: i32) -> (i32, i32) {
    %c0_i32 = arith.constant 0 : i32
    %c0_i32_0 = arith.constant 0 : i32
    %c0_i32_1 = arith.constant 0 : i32
    return %c0_i32, %c0_i32_0 : i32, i32
  }
  func.func @transform_2(%arg0: i32) -> (i32, i32) {
    %c0_i32 = arith.constant 0 : i32
    %c0_i32_0 = arith.constant 0 : i32
    %c0_i32_1 = arith.constant 0 : i32
    return %c0_i32, %c0_i32_0 : i32, i32
  }
  func.func @transform_3(%arg0: i32) -> i32 {
    %c0_i32 = arith.constant 0 : i32
    %c0_i32_0 = arith.constant 0 : i32
    return %c0_i32 : i32
  }
  func.func @transform_4(%arg0: i32) -> (i32, i32) {
    %c0_i32 = arith.constant 0 : i32
    %c0_i32_0 = arith.constant 0 : i32
    %c0_i32_1 = arith.constant 0 : i32
    return %c0_i32, %c0_i32_0 : i32, i32
  }
  func.func @transform_5(%arg0: i32) -> (i32, i32) {
    %c0_i32 = arith.constant 0 : i32
    %c0_i32_0 = arith.constant 0 : i32
    %c0_i32_1 = arith.constant 0 : i32
    return %c0_i32, %c0_i32_0 : i32, i32
  }
  func.func @transform_6(%arg0: i32) -> (i32, i32) {
    %c0_i32 = arith.constant 0 : i32
    %c0_i32_0 = arith.constant 0 : i32
    %c0_i32_1 = arith.constant 0 : i32
    return %c0_i32, %c0_i32_0 : i32, i32
  }
  func.func @transform_7(%arg0: i32) -> (i32, i32) {
    %c0_i32 = arith.constant 0 : i32
    %c0_i32_0 = arith.constant 0 : i32
    %c0_i32_1 = arith.constant 0 : i32
    return %c0_i32, %c0_i32_0 : i32, i32
  }
  func.func @transform_8(%arg0: i32) -> (i32, i32) {
    %c0_i32 = arith.constant 0 : i32
    %c0_i32_0 = arith.constant 0 : i32
    %c0_i32_1 = arith.constant 0 : i32
    return %c0_i32, %c0_i32_0 : i32, i32
  }
  func.func @transform_9(%arg0: i32) -> (i32, i32) {
    %c0_i32 = arith.constant 0 : i32
    %c0_i32_0 = arith.constant 0 : i32
    %c0_i32_1 = arith.constant 0 : i32
    return %c0_i32, %c0_i32_0 : i32, i32
  }
  func.func @transform_10(%arg0: i32) -> (i32, i32) {
    %c0_i32 = arith.constant 0 : i32
    %c0_i32_0 = arith.constant 0 : i32
    %c0_i32_1 = arith.constant 0 : i32
    return %c0_i32, %c0_i32_0 : i32, i32
  }
  func.func @transform_11(%arg0: i32) -> (i32, i32) {
    %c0_i32 = arith.constant 0 : i32
    %c0_i32_0 = arith.constant 0 : i32
    %c0_i32_1 = arith.constant 0 : i32
    return %c0_i32, %c0_i32_0 : i32, i32
  }
  func.func @transform_12(%arg0: i32) -> (i32, i32) {
    %c0_i32 = arith.constant 0 : i32
    %c0_i32_0 = arith.constant 0 : i32
    return %arg0, %c0_i32 : i32, i32
  }
}

</mosaic_0001>

<bundles_post_ra>
// kernel: mlp_forward.1
= control target key start
LH: loop header
LB: loop body
LE: loop exit
PB: predicated region body
PF: predicated region fallthrough
CT: control target
= control target key end

     0   :  { %17 = vsyncpa [#allocation3], 0  ;;  %s1046_s0 = inlined_call_operand.hbm [shape: f32[8,10], index: 0, kind: input, shape index: {}]   ;;  %s1047_s1 = inlined_call_operand.vmem [shape: bf16[10,32], index: 1, kind: input, shape index: {}]   ;;  %s1048_s2 = inlined_call_operand.vmem [shape: f32[1,32], index: 2, kind: input, shape index: {}]   ;;  %s1049_s3 = inlined_call_operand.hbm [shape: f32[4], index: 3, kind: input, shape index: {}]   ;;  %s1050_s4 = inlined_call_operand.vmem [shape: bf16[32,32], index: 4, kind: input, shape index: {}]   ;;  %s1051_s5 = inlined_call_operand.hbm [shape: f32[1,32], index: 5, kind: input, shape index: {}]   ;;  %s1052_s6 = inlined_call_operand.vmem [shape: bf16[32,32], index: 6, kind: input, shape index: {}]   ;;  %s1053_s7 = inlined_call_operand.hbm [shape: f32[1,32], index: 7, kind: input, shape index: {}]   ;;  %s1054_s8 = inlined_call_operand.hbm [shape: bf16[32,32], index: 8, kind: input, shape index: {}]   ;;  %s1055_s9 = inlined_call_operand.hbm [shape: f32[1,32], index: 9, kind: input, shape index: {}]   ;;  %s1056_s10 = inlined_call_operand.hbm [shape: bf16[32,128], index: 10, kind: input, shape index: {}]   ;;  %s1057_s11 = inlined_call_operand.hbm [shape: f32[1,128], index: 11, kind: input, shape index: {}]   ;;  %s1058_s12 = inlined_call_operand.hbm [shape: f32[8,128], index: 12, kind: output, shape index: {}]  }
   0x1   :  { %18 = vsyncpa [#allocation5], 0 }
   0x2   :  { %19 = vsyncpa [#allocation8], 0 }
   0x3   :  { %20 = vsyncpa [#allocation11], 0 }
   0x4   :  { %21 = vsyncpa [#allocation14], 0 }
   0x5   :  { %22 = vsyncpa [#allocation4], 0  ;;  %s812_s21 = smov [#allocation7]   ;;  %s813_s23 = smov [#allocation10]  }
   0x6   :  { %s53_s22 = sshll.u32 %s812_s21, 4  ;;  %s74_s24 = sshll.u32 %s813_s23, 4  ;;  %s54_s22 = int_to_ptr.vmem [resolvable:$true] %s53_s22  ;;  %s890_s24 = int_to_ptr.vmem [resolvable:$true] %s74_s24 }
   0x7   :  { %s614_s27 = scalar_lea.hbm %s1051_s5, 16 }
   0x8   :  { %p615_p0 = scmp.ne.s32.totalorder %s1051_s5, %s614_s27  ;;  %p618_p1 = scmp.lt.u32.totalorder %s614_s27, %s1051_s5 }
   0xa   :  { %p620_p2 = pnand %p618_p1, %p615_p0 }
   0xc   :  { %623 = shalt.err (!%p620_p2)
}
   0xd   :  { %s624_s14 = scalar_lea.vmem %s54_s22, 16  ;;  %s628_s15 = scalar_lea.vmem %s54_s22, 32 }
   0xe   :  { %p625_p3 = scmp.ne.s32.totalorder %s54_s22, %s624_s14  ;;  %p629_p4 = scmp.lt.s32.totalorder %s54_s22, %s54_s22 }
   0xf   :  { %p630_p5 = scmp.lt.s32.totalorder %s628_s15, %s624_s14 }
  0x11   :  { %p631_p6 = por %p630_p5, %p629_p4 }
  0x13   :  { %p632_p7 = pnand %p631_p6, %p625_p3 }
  0x15   :  { %635 = shalt.err (!%p632_p7)
}
  0x16   :  { %56 = dma.hbm_to_vmem [thread:$0]  %s1051_s5, 16, %s54_s22, [#allocation8]  }
  0x17   :  { %s636_s20 = scalar_lea.hbm %s1054_s8, 256 }
  0x18   :  { %p637_p8 = scmp.ne.s32.totalorder %s1054_s8, %s636_s20  ;;  %p640_p9 = scmp.lt.u32.totalorder %s636_s20, %s1054_s8 }
  0x1a   :  { %p642_p10 = pnand %p640_p9, %p637_p8 }
  0x1c   :  { %645 = shalt.err (!%p642_p10)
}
  0x1d   :  { %s646_s27 = scalar_lea.vmem %s890_s24, 256  ;;  %p651_p12 = scmp.lt.s32.totalorder %s890_s24, %s890_s24 }
  0x1e   :  { %p647_p11 = scmp.ne.s32.totalorder %s890_s24, %s646_s27  ;;  %p652_p13 = scmp.lt.s32.totalorder %s646_s27, %s646_s27 }
  0x20   :  { %p653_p0 = por %p652_p13, %p651_p12 }
  0x22   :  { %p654_p1 = pnand %p653_p0, %p647_p11 }
  0x24   :  { %657 = shalt.err (!%p654_p1)
}
  0x25   :  { %s814_s5 = smov 64   ;;  %s815_s22 = smov 4  }
  0x26   :  { %80 = dma.hbm_to_vmem [thread:$0]  %s1054_s8, 256, %s890_s24, [#allocation11], %s814_s5, %s814_s5, %s815_s22  }
  0x27   :  { %s816_s30 = smov [#allocation13]   ;;  %s817_s14 = smov [#allocation2]  }
  0x28   :  { %s96_s13 = sshll.u32 %s816_s30, 4  ;;  %s29_s15 = sshll.u32 %s817_s14, 4  ;;  %s97_s13 = int_to_ptr.vmem [resolvable:$true] %s96_s13  ;;  %s30_s15 = int_to_ptr.vmem [resolvable:$true] %s29_s15 }
  0x29   :  { %s658_s18 = scalar_lea.hbm %s1056_s10, 256 }
  0x2a   :  { %p659_p2 = scmp.ne.s32.totalorder %s1056_s10, %s658_s18  ;;  %p662_p3 = scmp.lt.u32.totalorder %s658_s18, %s1056_s10 }
  0x2c   :  { %p664_p4 = pnand %p662_p3, %p659_p2 }
  0x2e   :  { %667 = shalt.err (!%p664_p4)
}
  0x2f   :  { %s668_s8 = scalar_lea.vmem %s97_s13, 256  ;;  %p673_p6 = scmp.lt.s32.totalorder %s97_s13, %s97_s13 }
  0x30   :  { %p669_p5 = scmp.ne.s32.totalorder %s97_s13, %s668_s8  ;;  %p674_p7 = scmp.lt.s32.totalorder %s668_s8, %s668_s8 }
  0x32   :  { %p675_p8 = por %p674_p7, %p673_p6 }
  0x34   :  { %p676_p9 = pnand %p675_p8, %p669_p5 }
  0x36   :  { %679 = shalt.err (!%p676_p9)
}
  0x37   :  { %102 = dma.hbm_to_vmem [thread:$0]  %s1056_s10, 256, %s97_s13, [#allocation14], %s814_s5, %s814_s5, %s815_s22  }
  0x38   :  { %s680_s28 = scalar_lea.hbm %s1046_s0, 128 }
  0x39   :  { %p681_p10 = scmp.ne.s32.totalorder %s1046_s0, %s680_s28  ;;  %p684_p11 = scmp.lt.u32.totalorder %s680_s28, %s1046_s0 }
  0x3b   :  { %p686_p12 = pnand %p684_p11, %p681_p10 }
  0x3d   :  { %689 = shalt.err (!%p686_p12)
}
  0x3e   :  { %s690_s17 = scalar_lea.vmem %s30_s15, 128  ;;  %p695_p0 = scmp.lt.s32.totalorder %s30_s15, %s30_s15 }
  0x3f   :  { %p691_p13 = scmp.ne.s32.totalorder %s30_s15, %s690_s17  ;;  %p696_p1 = scmp.lt.s32.totalorder %s690_s17, %s690_s17 }
  0x41   :  { %p697_p2 = por %p696_p1, %p695_p0 }
  0x43   :  { %p698_p3 = pnand %p697_p2, %p691_p13 }
  0x45   :  { %701 = shalt.err (!%p698_p3)
}
  0x46   :  { %32 = dma.hbm_to_vmem [thread:$0]  %s1046_s0, 128, %s30_s15, [#allocation3]  }
  0x47   :  { %s702_s18 = scalar_lea.hbm %s1049_s3, 16 }
  0x48   :  { %p703_p4 = scmp.ne.s32.totalorder %s1049_s3, %s702_s18  ;;  %p706_p5 = scmp.lt.u32.totalorder %s702_s18, %s1049_s3 }
  0x4a   :  { %p708_p6 = pnand %p706_p5, %p703_p4 }
  0x4c   :  { %711 = shalt.err (!%p708_p6)
}
  0x4d   :  { %s818_s8 = smov [#allocation6]   ;;  %s819_s0 = smov [#allocation9]  }
  0x4e   :  { %44 = dma.hbm_to_smem %s1049_s3, 16, %s818_s8, [#allocation5]  }
  0x4f   :  { %s65_s15 = sshll.u32 %s819_s0, 4  ;;  %s820_s26 = smov [#allocation12]   ;;  %s66_s15 = int_to_ptr.vmem [resolvable:$true] %s65_s15 }
  0x50   :  { %s87_s27 = sshll.u32 %s820_s26, 4  ;;  %s712_s30 = scalar_lea.hbm %s1053_s7, 16  ;;  %s88_s27 = int_to_ptr.vmem [resolvable:$true] %s87_s27 }
  0x51   :  { %p713_p7 = scmp.ne.s32.totalorder %s1053_s7, %s712_s30  ;;  %p716_p8 = scmp.lt.u32.totalorder %s712_s30, %s1053_s7 }
  0x53   :  { %p718_p9 = pnand %p716_p8, %p713_p7 }
  0x55   :  { %721 = shalt.err (!%p718_p9)
}
  0x56   :  { %s722_s3 = scalar_lea.vmem %s66_s15, 16  ;;  %s726_s5 = scalar_lea.vmem %s66_s15, 32 }
  0x57   :  { %p723_p10 = scmp.ne.s32.totalorder %s66_s15, %s722_s3  ;;  %p727_p11 = scmp.lt.s32.totalorder %s66_s15, %s66_s15 }
  0x58   :  { %p728_p12 = scmp.lt.s32.totalorder %s726_s5, %s722_s3 }
  0x5a   :  { %p729_p13 = por %p728_p12, %p727_p11 }
  0x5c   :  { %p730_p0 = pnand %p729_p13, %p723_p10 }
  0x5e   :  { %733 = shalt.err (!%p730_p0)
}
  0x5f   :  { %68 = dma.hbm_to_vmem [thread:$0]  %s1053_s7, 16, %s66_s15, [#allocation8]  }
  0x60   :  { %s734_s20 = scalar_lea.hbm %s1055_s9, 16 }
  0x61   :  { %p735_p1 = scmp.ne.s32.totalorder %s1055_s9, %s734_s20  ;;  %p738_p2 = scmp.lt.u32.totalorder %s734_s20, %s1055_s9 }
  0x63   :  { %p740_p3 = pnand %p738_p2, %p735_p1 }
  0x65   :  { %743 = shalt.err (!%p740_p3)
}
  0x66   :  { %s744_s25 = scalar_lea.vmem %s88_s27, 16  ;;  %s748_s0 = scalar_lea.vmem %s88_s27, 32 }
  0x67   :  { %p745_p4 = scmp.ne.s32.totalorder %s88_s27, %s744_s25  ;;  %p749_p5 = scmp.lt.s32.totalorder %s88_s27, %s88_s27 }
  0x68   :  { %p750_p6 = scmp.lt.s32.totalorder %s748_s0, %s744_s25 }
  0x6a   :  { %p751_p7 = por %p750_p6, %p749_p5 }
  0x6c   :  { %p752_p8 = pnand %p751_p7, %p745_p4 }
  0x6e   :  { %755 = shalt.err (!%p752_p8)
}
  0x6f   :  { %90 = dma.hbm_to_vmem [thread:$0]  %s1055_s9, 16, %s88_s27, [#allocation11]  }
  0x70   :  { %s821_s26 = smov [#allocation15]   ;;  %s756_s14 = scalar_lea.hbm %s1057_s11, 16 }
  0x71   :  { %s109_s28 = sshll.u32 %s821_s26, 4  ;;  %p757_p9 = scmp.ne.s32.totalorder %s1057_s11, %s756_s14  ;;  %s110_s28 = int_to_ptr.vmem [resolvable:$true] %s109_s28 }
  0x72   :  { %p760_p10 = scmp.lt.u32.totalorder %s756_s14, %s1057_s11 }
  0x74   :  { %p762_p11 = pnand %p760_p10, %p757_p9 }
  0x76   :  { %765 = shalt.err (!%p762_p11)
}
  0x77   :  { %s766_s5 = scalar_lea.vmem %s110_s28, 16  ;;  %s770_s9 = scalar_lea.vmem %s110_s28, 32 }
  0x78   :  { %p767_p12 = scmp.ne.s32.totalorder %s110_s28, %s766_s5  ;;  %p771_p13 = scmp.lt.s32.totalorder %s110_s28, %s110_s28 }
  0x79   :  { %p772_p0 = scmp.lt.s32.totalorder %s770_s9, %s766_s5 }
  0x7b   :  { %p773_p1 = por %p772_p0, %p771_p13 }
  0x7d   :  { %p774_p2 = pnand %p773_p1, %p767_p12 }
  0x7f   :  { %777 = shalt.err (!%p774_p2)
}
  0x80   :  { %112 = dma.hbm_to_vmem [thread:$0]  %s1057_s11, 16, %s110_s28, [#allocation14]  }
  0x81   :  { %800 = dma.done.wait [#allocation3], 128  }
  0x82   :  { %801 = vsyncadd [#allocation3], 4294967168 }
  0x83   :  { %802 = dma.done.wait [#allocation5], 16  }
  0x84   :  { %803 = vsyncadd [#allocation5], 4294967280 }
  0x85   :  { %804 = dma.done.wait [#allocation8], 32  }
  0x86   :  { %805 = vsyncadd [#allocation8], 4294967264 }
  0x87   :  { %806 = dma.done.wait [#allocation11], 272  }
  0x88   :  { %807 = vsyncadd [#allocation11], 4294967024 }
  0x89   :  { %808 = dma.done.wait [#allocation14], 272  }
  0x8a   :  { %809 = vsyncadd [#allocation14], 4294967024 }
  0x8b   :  { %137 = sfence }
  0x8c   :  { %vm163_vm0 = vcmask 1044480   ;;  %v822_v0 = vmov 0.0   ;;  %v605_v1 = vld [vmem:[%s1047_s1] sm:$0x1f]   ;;  %vm823_vm1 = vmmov 0   ;;  %vm159_vm2 = vcmask 80896  }
  0x8d   :  { %554 = vmatprep.subr.bf16.mxu0 %v822_v0  ;;  %v143_v2 = vld [vmem:[#allocation2] sm:$0xff]  ;;  %560 = vmatprep.subr.bf16.mxu1 %v822_v0  ;;  %v165_v3 = vsel %vm163_vm0, %v605_v1, 0  ;;  %v607_v6 = vld [vmem:[%s1050_s4 + $0x8] sm:$0xff]   ;;  %s139_s21 = sld [smem:[#allocation6]]  ;;  %vm236_vm3 = vcmask 261120   ;;  %s518_s0 = sld [smem:[#allocation6 + $0x1]] }
  0x8e   :  { %556 = vmatprep.mubr.msk.bf16.mxu0 %vm823_vm1, %v822_v0  ;;  %564 = vmatprep.mubr.msk.bf16.mxu1 %vm823_vm1, %v822_v0  ;;  %v144_v4 = vpack.c.bf16 %v143_v2, %v143_v2  ;;  %v606_v5 = vld [vmem:[%s1050_s4] sm:$0xff]   ;;  %v609_v20 = vld [vmem:[%s1052_s6 + $0x8] sm:$0xff]   ;;  %v611_v34 = vld [vmem:[#allocation10 + $0x8] sm:$0xff]   ;;  %s520_s7 = sld [smem:[#allocation6 + $0x3]]  ;;  %s824_s15 = smov [#allocation16]  }
  0x8f   :  { %555 = vmatpush3.bf16.msra.mxu0 %v165_v3  ;;  %561 = vmatpush3.bf16.msra.mxu1 %v606_v5  ;;  %v521_v7 = vld [vmem:[%s1048_s2] ss:$0 sm:$0xff]  ;;  %v524_v21 = vld [vmem:[#allocation7] ss:$0 sm:$0xff]  ;;  %v610_v33 = vld [vmem:[#allocation10] sm:$0xff]   ;;  %s505_s26 = sshll.u32 %s824_s15, 4  ;;  %s506_s26 = int_to_ptr.vmem [resolvable:$true] %s505_s26 }
  0x90   :  { %568 = vmatprep.subr.bf16.mxu0 %v822_v0  ;;  %562 = vmatprep.subr.bf16.mxu1 %v822_v0  ;;  %v608_v19 = vld [vmem:[%s1052_s6] sm:$0xff]   ;;  %s519_s6 = sld [smem:[#allocation6 + $0x2]]  ;;  %v528_v35 = vld [vmem:[#allocation9] ss:$0 sm:$0xff]  ;;  %v532_v50 = vld [vmem:[#allocation12] ss:$0 sm:$0xff]  ;;  %p783_p4 = scmp.lt.s32.totalorder %s506_s26, %s506_s26 }
  0x91   :  { %v612_v48 = vld [vmem:[#allocation13] sm:$0xff]   ;;  %v613_v49 = vld [vmem:[#allocation13 + $0x8] sm:$0xff]   ;;  %v536_v63 = vld [vmem:[#allocation15] ss:$0 sm:$0xff]  ;;  %s778_s28 = scalar_lea.vmem %s506_s26, 128 }
  0x92   :  { %557 = vmatmul.mubr.msk.bf16.vlgmr.msra.gmra.mrb[0].mxu0 %vm159_vm2, %v144_v4  ;;  %p779_p3 = scmp.ne.s32.totalorder %s506_s26, %s778_s28  ;;  %p784_p5 = scmp.lt.s32.totalorder %s778_s28, %s778_s28 }
  0x93   :  { %572 = vmatprep.mubr.msk.bf16.mxu0 %vm823_vm1, %v822_v0  ;;  %563 = vmatpush3.bf16.msra.mxu1 %v607_v6  ;;  %v209_v11 = vstv %s139_s21  ;;  %v282_v25 = vstv %s518_s0 }
  0x94   :  { %576 = vmatprep.subr.bf16.mxu1 %v822_v0  ;;  %569 = vmatpush3.bf16.msra.mxu0 %v608_v19  ;;  %v427_v54 = vstv %s520_s7  ;;  %p785_p6 = por %p784_p5, %p783_p4 }
  0x95   :  { %570 = vmatprep.subr.bf16.mxu0 %v822_v0 }
  0x96   :  { %v354_v39 = vstv %s519_s6  ;;  %p786_p7 = pnand %p785_p6, %p779_p3 }
  0x98   :  { %571 = vmatpush3.bf16.msra.mxu0 %v609_v20 }
  0x99   :  { %584 = vmatprep.subr.bf16.mxu0 %v822_v0 }
 0x165   :  { %v201_v8 = vpop.f32.mrb[0].mxu0 }
 0x166   :  { %v202_v9 = vadd.f32 %v521_v7, %v201_v8  ;;  %v558_v10 = vpop.f32.mrb[1].mxu0 }
 0x167   :  { %v204_v12 = vpop.f32.mrb[2].mxu0 }
 0x168   :  { %v208_v13 = vmin.f32 %v202_v9, 0.0  ;;  %v559_v14 = vpop.f32.mrb[3].mxu0  ;;  %v207_v15 = vmax.f32 %v202_v9, 0.0 }
 0x16a   :  { %v210_v16 = vmul.f32 %v209_v11, %v208_v13 }
 0x16c   :  { %v211_v17 = vadd.f32 %v210_v16, %v207_v15 }
 0x16e   :  { %v212_v18 = vpack.c.bf16 %v211_v17, %v211_v17 }
 0x170   :  { %565 = vmatmul.mubr.msk.bf16.vlgmr.msra.gmra.mrb[0].mxu1 %vm236_vm3, %v212_v18 }
 0x171   :  { %580 = vmatprep.mubr.msk.bf16.mxu1 %vm823_vm1, %v822_v0  ;;  %577 = vmatpush3.bf16.msra.mxu1 %v610_v33 }
 0x172   :  { %578 = vmatprep.subr.bf16.mxu1 %v822_v0 }
 0x175   :  { %579 = vmatpush3.bf16.msra.mxu1 %v611_v34 }
 0x243   :  { %v274_v22 = vpop.f32.mrb[0].mxu1 }
 0x244   :  { %v275_v23 = vadd.f32 %v524_v21, %v274_v22  ;;  %v566_v24 = vpop.f32.mrb[1].mxu1 }
 0x245   :  { %v277_v26 = vpop.f32.mrb[2].mxu1 }
 0x246   :  { %v281_v27 = vmin.f32 %v275_v23, 0.0  ;;  %v567_v28 = vpop.f32.mrb[3].mxu1  ;;  %v280_v29 = vmax.f32 %v275_v23, 0.0 }
 0x248   :  { %v283_v30 = vmul.f32 %v282_v25, %v281_v27 }
 0x24a   :  { %v284_v31 = vadd.f32 %v283_v30, %v280_v29 }
 0x24c   :  { %v285_v32 = vpack.c.bf16 %v284_v31, %v284_v31 }
 0x24e   :  { %573 = vmatmul.mubr.msk.bf16.vlgmr.msra.gmra.mrb[4].mxu0 %vm236_vm3, %v285_v32 }
 0x24f   :  { %588 = vmatprep.mubr.msk.bf16.mxu0 %vm823_vm1, %v822_v0  ;;  %585 = vmatpush3.bf16.msra.mxu0 %v612_v48 }
 0x250   :  { %586 = vmatprep.subr.bf16.mxu0 %v822_v0 }
 0x253   :  { %587 = vmatpush3.bf16.msra.mxu0 %v613_v49 }
 0x321   :  { %v346_v36 = vpop.f32.mrb[4].mxu0 }
 0x322   :  { %v347_v37 = vadd.f32 %v528_v35, %v346_v36  ;;  %v574_v38 = vpop.f32.mrb[5].mxu0 }
 0x323   :  { %v349_v40 = vpop.f32.mrb[6].mxu0 }
 0x324   :  { %v353_v41 = vmin.f32 %v347_v37, 0.0  ;;  %v575_v42 = vpop.f32.mrb[7].mxu0  ;;  %v352_v43 = vmax.f32 %v347_v37, 0.0 }
 0x326   :  { %v355_v44 = vmul.f32 %v354_v39, %v353_v41 }
 0x328   :  { %v356_v45 = vadd.f32 %v355_v44, %v352_v43 }
 0x32a   :  { %v357_v46 = vadd.f32 %v356_v45, %v284_v31 }
 0x32c   :  { %v358_v47 = vpack.c.bf16 %v357_v46, %v357_v46 }
 0x32e   :  { %581 = vmatmul.mubr.msk.bf16.vlgmr.msra.gmra.mrb[4].mxu1 %vm236_vm3, %v358_v47 }
 0x401   :  { %v419_v51 = vpop.f32.mrb[4].mxu1 }
 0x402   :  { %v420_v52 = vadd.f32 %v532_v50, %v419_v51  ;;  %v582_v53 = vpop.f32.mrb[5].mxu1 }
 0x403   :  { %v422_v55 = vpop.f32.mrb[6].mxu1 }
 0x404   :  { %v426_v56 = vmin.f32 %v420_v52, 0.0  ;;  %v583_v57 = vpop.f32.mrb[7].mxu1  ;;  %v425_v58 = vmax.f32 %v420_v52, 0.0 }
 0x406   :  { %v428_v59 = vmul.f32 %v427_v54, %v426_v56 }
 0x408   :  { %v429_v60 = vadd.f32 %v428_v59, %v425_v58 }
 0x40a   :  { %v430_v61 = vadd.f32 %v429_v60, %v357_v46 }
 0x40c   :  { %v431_v62 = vpack.c.bf16 %v430_v61, %v430_v61 }
 0x40e   :  { %589 = vmatmul.mubr.msk.bf16.vlgmr.msra.gmra.mrb[8].mxu0 %vm236_vm3, %v431_v62 }
 0x4e1   :  { %v492_v0 = vpop.f32.mrb[8].mxu0 }
 0x4e2   :  { %v493_v1 = vadd.f32 %v536_v63, %v492_v0  ;;  %v590_v2 = vpop.f32.mrb[9].mxu0 }
 0x4e3   :  { %v495_v3 = vpop.f32.mrb[10].mxu0 }
 0x4e4   :  { %498 = vst [vmem:[#allocation16] sm:$0xff] %v493_v1  ;;  %v591_v4 = vpop.f32.mrb[11].mxu0 }
 0x4e5   :  { %789 = shalt.err (!%p786_p7)
}
 0x4e6   :  { %s790_s14 = scalar_lea.hbm %s1058_s12, 128 }
 0x4e7   :  { %p791_p8 = scmp.ne.s32.totalorder %s1058_s12, %s790_s14  ;;  %p794_p9 = scmp.lt.u32.totalorder %s790_s14, %s1058_s12 }
 0x4e9   :  { %p796_p10 = pnand %p794_p9, %p791_p8 }
 0x4eb   :  { %799 = shalt.err (!%p796_p10)
}
 0x4ec   :  { %508 = dma.vmem_to_hbm [thread:$0]  %s506_s26, 128, %s1058_s12, [#allocation4]  }
 0x4ed   :  { %810 = dma.done.wait [#allocation4], 128  }
 0x4ee   :  { %811 = vsyncadd [#allocation4], 4294967168 }
 0x4ef   :  { %512 = vsyncpa [#allocation3], 1 }
 0x4f0   :  { %513 = vsyncpa [#allocation8], 1 }
 0x4f1   :  { %514 = vsyncpa [#allocation11], 1 }
 0x4f2   :  { %515 = vsyncpa [#allocation14], 1 }
 0x4f3   :  { %516 = vsyncpa [#allocation4], 1 }
 0x4f4   :  { %517 = vsyncpa [#allocation5], 1 }

</bundles_post_ra>
